<compile_context>
chip_gen: v7x
topology: tpu7x:2x2x1
jax: 0.10.0
libtpu: 0.0.40
codegen_flags: <defaults>
</compile_context>

<pallas_src>
import math

import jax
import jax.numpy as jnp
from jax.experimental import pallas as pl
from jax.experimental.pallas import tpu as pltpu

_LANES = 128
_SUBLANES = 8
_MAX_LANE_W = 8192            # fold rows into lanes up to this width (32 KiB f32 row)
_SMALL_BYPASS_BYTES = 1 << 20  # below this, fused XLA beats a kernel launch


def _scale_shift_kernel(x_ref, es_ref, t_ref, z_ref):
    # Single VPU fused multiply-add; es/t are (1, lane_w) and broadcast over rows.
    z_ref[...] = x_ref[...] * es_ref[...] + t_ref[...]


def _vmem_budget():
    """Returns (vmem_limit_bytes, per-tile byte budget), generation aware."""
    try:
        cap = int(pltpu.get_tpu_info().vmem_capacity_bytes)
    except Exception:
        cap = 64 << 20  # conservative (v7x-sized) fallback
    vmem_limit = min(cap // 2, 48 << 20)          # 48 MiB on 128 MiB chips, 32 MiB on v7x
    # Live buffers ~= x-tile + z-tile, each double-buffered (4x tile); 20% headroom.
    tile_budget = (vmem_limit * 4 // 5) // 4
    return vmem_limit, tile_budget


def _run_scale_shift(x2, es2, t2, *, max_block_rows=None):
    """x2: (rows, lane_w) with lane_w % 128 == 0; es2/t2: (1, lane_w)."""
    rows, lane_w = x2.shape
    itemsize = x2.dtype.itemsize
    vmem_limit, tile_budget = _vmem_budget()

    # Largest row tile (multiple of 8 sublanes) that fits the per-tile budget.
    block_rows = (tile_budget // (lane_w * itemsize)) // _SUBLANES * _SUBLANES
    block_rows = max(_SUBLANES, block_rows)
    if max_block_rows is not None:
        block_rows = max(_SUBLANES, min(block_rows, max_block_rows))

    # Keep >= 2 grid steps on non-tiny problems so v7x can shard the parallel
    # grid axis across both TensorCores (per-step overhead is ~0.35 us, negligible).
    total_bytes = rows * lane_w * itemsize
    if total_bytes > (2 << 20):
        half = pl.cdiv(pl.cdiv(rows, 2), _SUBLANES) * _SUBLANES
        block_rows = min(block_rows, max(_SUBLANES, half))

    if rows <= block_rows:
        block_rows = rows  # full-extent block (exempt from the (8,128) rule)

    grid = (pl.cdiv(rows, block_rows),)
    return pl.pallas_call(
        _scale_shift_kernel,
        out_shape=jax.ShapeDtypeStruct((rows, lane_w), x2.dtype),
        grid=grid,
        in_specs=[
            pl.BlockSpec((block_rows, lane_w), lambda i: (i, 0)),
            pl.BlockSpec((1, lane_w), lambda i: (0, 0)),
            pl.BlockSpec((1, lane_w), lambda i: (0, 0)),
        ],
        out_specs=pl.BlockSpec((block_rows, lane_w), lambda i: (i, 0)),
        compiler_params=pltpu.CompilerParams(
            dimension_semantics=("parallel",),
            vmem_limit_bytes=vmem_limit,
        ),
    )(x2, es2, t2)


def affine_constant_flow_forward(x, s=None, t=None, *, force_kernel=False,
                                 max_block_rows=None):
    """x: (N, dim), s/t: (1, dim) or None  ->  (z (N, dim), log_det)."""
    n, dim = x.shape

    if s is None:  # scale=False: module uses zeros shaped like x -> log_det is (N,) zeros
        s_arr = jnp.zeros((1, dim), dtype=x.dtype)
        log_det = jnp.zeros((n,), dtype=x.dtype)
    else:
        s_arr = s
        log_det = jnp.sum(s, axis=1)          # (1,) — depends only on s, keep out of kernel
    t_arr = jnp.zeros((1, dim), dtype=x.dtype) if t is None else t

    es = jnp.exp(s_arr)                        # hoist the transcendental out of the stream

    total_bytes = x.size * x.dtype.itemsize
    if (not force_kernel) and total_bytes < _SMALL_BYPASS_BYTES:
        # Tiny problem: kernel launch + DMA setup would dominate.
        return x * es + t_arr, log_det

    lcm = dim * _LANES // math.gcd(dim, _LANES)  # lcm(dim, 128)
    if lcm <= _MAX_LANE_W:
        # Lane-dense path: pad N (not dim!) up to a multiple of reps, then flatten so
        # the last dim is a multiple of 128 -> unmasked vst, roofline HBM traffic.
        reps = lcm // dim
        rows = pl.cdiv(n, reps)
        rows_pad = rows * reps - n
        xp = jnp.pad(x, ((0, rows_pad), (0, 0))) if rows_pad else x
        lane_w = lcm
        # Fold pairs of rows into the lane dim for fewer, fatter grid steps.
        while lane_w * 2 <= _MAX_LANE_W and rows % 2 == 0 and rows >= 2 * _SUBLANES:
            lane_w *= 2
            reps *= 2
            rows //= 2
        z2 = _run_scale_shift(
            xp.reshape(rows, lane_w),
            jnp.tile(es, (1, reps)),
            jnp.tile(t_arr, (1, reps)),
            max_block_rows=max_block_rows,
        )
        z = z2.reshape(rows * reps, dim)[:n]
    else:
        # Large, unaligned dim: feature padding to the next multiple of 128 is cheap
        # here (dim is already several hundred+), so overhead is modest.
        dim_pad = pl.cdiv(dim, _LANES) * _LANES
        _, tile_budget = _vmem_budget()
        if _SUBLANES * dim_pad * x.dtype.itemsize > tile_budget:
            # TODO(synk): feature-dim tiling for extremely wide rows; plain XLA is
            # already at the bandwidth roofline for this degenerate case.
            return x * es + t_arr, log_det
        pad = ((0, 0), (0, dim_pad - dim))
        z2 = _run_scale_shift(jnp.pad(x, pad), jnp.pad(es, pad), jnp.pad(t_arr, pad),
                              max_block_rows=max_block_rows)
        z = z2[:, :dim]

    return z, log_det


if __name__ == "__main__":
    key = jax.random.PRNGKey(0)
    k_x, k_s, k_t, k_x2, k_s2, k_t2, k_x3 = jax.random.split(key, 7)

    # Small shapes consistent with the module: batch=8, hidden dim=32.
    N, DIM = 8, 32
    x = jax.random.normal(k_x, (N, DIM), dtype=jnp.float32)
    s = jax.random.normal(k_s, (1, DIM), dtype=jnp.float32)   # learned scale param
    t = jax.random.normal(k_t, (1, DIM), dtype=jnp.float32)   # learned shift param

    z, log_det = affine_constant_flow_forward(x, s, t, force_kernel=True)
    jax.block_until_ready((z, log_det))
    z_ref = x * jnp.exp(s) + t
    assert z.shape == (N, DIM) and log_det.shape == (1,)
    assert jnp.allclose(z, z_ref, atol=1e-5, rtol=1e-5)
    assert jnp.allclose(log_det, jnp.sum(s, axis=1), atol=1e-5, rtol=1e-5)

    # Small-problem bypass (no kernel launch) must agree.
    z_b, ld_b = affine_constant_flow_forward(x, s, t)
    assert jnp.allclose(z_b, z_ref, atol=1e-5, rtol=1e-5)
    assert jnp.allclose(ld_b, jnp.sum(s, axis=1), atol=1e-5, rtol=1e-5)

    # Unaligned feature dim -> row-padded lane-dense path (no feature padding).
    N2, DIM2 = 16, 20
    x2 = jax.random.normal(k_x2, (N2, DIM2), dtype=jnp.float32)
    s2 = jax.random.normal(k_s2, (1, DIM2), dtype=jnp.float32)
    t2 = jax.random.normal(k_t2, (1, DIM2), dtype=jnp.float32)
    z2, ld2 = affine_constant_flow_forward(x2, s2, t2, force_kernel=True)
    jax.block_until_ready((z2, ld2))
    assert jnp.allclose(z2, x2 * jnp.exp(s2) + t2, atol=1e-5, rtol=1e-5)
    assert jnp.allclose(ld2, jnp.sum(s2, axis=1), atol=1e-5, rtol=1e-5)

    # Multi-step grid with a partial (masked) last block on the lane-dense path.
    N3 = 36
    x3 = jax.random.normal(k_x3, (N3, DIM), dtype=jnp.float32)
    z3, ld3 = affine_constant_flow_forward(x3, s, t, force_kernel=True, max_block_rows=8)
    jax.block_until_ready((z3, ld3))
    assert jnp.allclose(z3, x3 * jnp.exp(s) + t, atol=1e-5, rtol=1e-5)
    assert jnp.allclose(ld3, jnp.sum(s, axis=1), atol=1e-5, rtol=1e-5)

    # scale=False variant (s is None): z = x + t, log_det = zeros of shape (N,).
    z4, ld4 = affine_constant_flow_forward(x, None, t, force_kernel=True)
    jax.block_until_ready((z4, ld4))
    assert jnp.allclose(z4, x + t, atol=1e-5, rtol=1e-5)
    assert ld4.shape == (N,) and jnp.allclose(ld4, 0.0)

    print("KERNEL_OK")
</pallas_src>

<mosaic_0001>
module attributes {stable_mosaic.version = 11 : i64} {
  func.func @_scale_shift_kernel(%arg0: i32, %arg1: memref<2x128xf32, #tpu.memory_space<vmem>>, %arg2: memref<1x128xf32, #tpu.memory_space<vmem>>, %arg3: memref<1x128xf32, #tpu.memory_space<vmem>>, %arg4: memref<2x128xf32, #tpu.memory_space<vmem>>) attributes {dimension_semantics = [#tpu.dimension_semantics<parallel>], iteration_bounds = array<i64: 1>, scalar_prefetch = 0 : i64, scratch_operands = 0 : i64, tpu.core_type = #tpu.core_type<tc>, window_params = [{transform_indices = @transform_0, window_bounds = array<i64: 2, 128>}, {pipeline_mode = #tpu.pipeline_mode<synchronous>, transform_indices = @transform_1, window_bounds = array<i64: 1, 128>}, {pipeline_mode = #tpu.pipeline_mode<synchronous>, transform_indices = @transform_2, window_bounds = array<i64: 1, 128>}, {transform_indices = @transform_3, window_bounds = array<i64: 2, 128>}]} {
    %c0 = arith.constant 0 : index
    %c0_0 = arith.constant 0 : index
    %0 = vector.load %arg1[%c0, %c0_0] : memref<2x128xf32, #tpu.memory_space<vmem>>, vector<2x128xf32>
    %c0_1 = arith.constant 0 : index
    %c0_2 = arith.constant 0 : index
    %1 = vector.load %arg2[%c0_1, %c0_2] : memref<1x128xf32, #tpu.memory_space<vmem>>, vector<1x128xf32>
    %2 = vector.broadcast %1 : vector<1x128xf32> to vector<2x128xf32>
    %3 = arith.mulf %0, %2 : vector<2x128xf32>
    %c0_3 = arith.constant 0 : index
    %c0_4 = arith.constant 0 : index
    %4 = vector.load %arg3[%c0_3, %c0_4] : memref<1x128xf32, #tpu.memory_space<vmem>>, vector<1x128xf32>
    %5 = vector.broadcast %4 : vector<1x128xf32> to vector<2x128xf32>
    %6 = arith.addf %3, %5 : vector<2x128xf32>
    %c0_5 = arith.constant 0 : index
    %c0_6 = arith.constant 0 : index
    %7 = vector.load %arg4[%c0_5, %c0_6] : memref<2x128xf32, #tpu.memory_space<vmem>>, vector<2x128xf32>
    tpu.vector_store %arg4[%c0_5, %c0_6], %6 {strides = array<i32>} : memref<2x128xf32, #tpu.memory_space<vmem>>, vector<2x128xf32>,
    return
  }
  func.func @transform_0(%arg0: i32) -> (i32, i32) {
    %c0_i32 = arith.constant 0 : i32
    %c0_i32_0 = arith.constant 0 : i32
    return %arg0, %c0_i32 : i32, i32
  }
  func.func @transform_1(%arg0: i32) -> (i32, i32) {
    %c0_i32 = arith.constant 0 : i32
    %c0_i32_0 = arith.constant 0 : i32
    %c0_i32_1 = arith.constant 0 : i32
    return %c0_i32, %c0_i32_0 : i32, i32
  }
  func.func @transform_2(%arg0: i32) -> (i32, i32) {
    %c0_i32 = arith.constant 0 : i32
    %c0_i32_0 = arith.constant 0 : i32
    %c0_i32_1 = arith.constant 0 : i32
    return %c0_i32, %c0_i32_0 : i32, i32
  }
  func.func @transform_3(%arg0: i32) -> (i32, i32) {
    %c0_i32 = arith.constant 0 : i32
    %c0_i32_0 = arith.constant 0 : i32
    return %arg0, %c0_i32 : i32, i32
  }
}

</mosaic_0001>

<bundles_post_ra>
// kernel: tpu_custom_call.1
= control target key start
LH: loop header
LB: loop body
LE: loop exit
PB: predicated region body
PF: predicated region fallthrough
CT: control target
= control target key end

     0   :  { %8 = vsyncpa [#allocation3], 0  ;;  %s164_s0 = inlined_call_operand.hbm [shape: f32[2,128], index: 0, kind: input, shape index: {}]   ;;  %s165_s1 = inlined_call_operand.vmem [shape: f32[1,128], index: 1, kind: input, shape index: {}]   ;;  %s166_s2 = inlined_call_operand.vmem [shape: f32[1,128], index: 2, kind: input, shape index: {}]   ;;  %s167_s3 = inlined_call_operand.hbm [shape: f32[2,128], index: 3, kind: output, shape index: {}]  }
   0x1   :  { %9 = vsyncpa [#allocation4], 0  ;;  %s112_s12 = smov [#allocation2]   ;;  %s64_s16 = scalar_lea.hbm %s164_s0, 32 }
   0x2   :  { %s16_s13 = sshll.u32 %s112_s12, 4  ;;  %p65_p0 = scmp.ne.s32.totalorder %s164_s0, %s64_s16  ;;  %s17_s13 = int_to_ptr.vmem [resolvable:$true] %s16_s13 }
   0x3   :  { %p68_p1 = scmp.lt.u32.totalorder %s64_s16, %s164_s0 }
   0x5   :  { %p70_p2 = pnand %p68_p1, %p65_p0 }
   0x7   :  { %73 = shalt.err (!%p70_p2)
}
   0x8   :  { %s74_s21 = scalar_lea.vmem %s17_s13, 32  ;;  %p79_p4 = scmp.lt.s32.totalorder %s17_s13, %s17_s13 }
   0x9   :  { %p75_p3 = scmp.ne.s32.totalorder %s17_s13, %s74_s21  ;;  %p80_p5 = scmp.lt.s32.totalorder %s74_s21, %s74_s21 }
   0xb   :  { %p81_p6 = por %p80_p5, %p79_p4 }
   0xd   :  { %p82_p7 = pnand %p81_p6, %p75_p3 }
   0xf   :  { %85 = shalt.err (!%p82_p7)
}
  0x10   :  { %19 = dma.hbm_to_vmem [thread:$0]  %s164_s0, 32, %s17_s13, [#allocation3]  }
  0x11   :  { %108 = dma.done.wait [#allocation3], 32  }
  0x12   :  { %109 = vsyncadd [#allocation3], 4294967264  ;;  %s113_s24 = smov [#allocation5]   ;;  %v27_v0 = vld [vmem:[#allocation2] sm:$0x3] }
  0x13   :  { %s51_s25 = sshll.u32 %s113_s24, 4  ;;  %v60_v1 = vld [vmem:[%s165_s1] ss:$0 sm:$0xff]  ;;  %s52_s25 = int_to_ptr.vmem [resolvable:$true] %s51_s25 }
  0x14   :  { %v61_v2 = vld [vmem:[%s166_s2] ss:$0 sm:$0xff]  ;;  %v35_v3 = vmul.f32 %v60_v1, %v27_v0  ;;  %s86_s30 = scalar_lea.vmem %s52_s25, 32  ;;  %p91_p9 = scmp.lt.s32.totalorder %s52_s25, %s52_s25 }
  0x15   :  { %p87_p8 = scmp.ne.s32.totalorder %s52_s25, %s86_s30  ;;  %p92_p10 = scmp.lt.s32.totalorder %s86_s30, %s86_s30 }
  0x16   :  { %v43_v4 = vadd.f32 %v61_v2, %v35_v3 }
  0x17   :  { %p93_p11 = por %p92_p10, %p91_p9 }
  0x18   :  { %44 = vst [vmem:[#allocation5] sm:$0x3] %v43_v4 }
  0x19   :  { %p94_p12 = pnand %p93_p11, %p87_p8 }
  0x1b   :  { %97 = shalt.err (!%p94_p12)
}
  0x1c   :  { %s98_s5 = scalar_lea.hbm %s167_s3, 32 }
  0x1d   :  { %p99_p13 = scmp.ne.s32.totalorder %s167_s3, %s98_s5  ;;  %p102_p0 = scmp.lt.u32.totalorder %s98_s5, %s167_s3 }
  0x1f   :  { %p104_p1 = pnand %p102_p0, %p99_p13 }
  0x21   :  { %107 = shalt.err (!%p104_p1)
}
  0x22   :  { %54 = dma.vmem_to_hbm [thread:$0]  %s52_s25, 32, %s167_s3, [#allocation4]  }
  0x23   :  { %110 = dma.done.wait [#allocation4], 32  }
  0x24   :  { %111 = vsyncadd [#allocation4], 4294967264 }
  0x25   :  { %58 = vsyncpa [#allocation3], 1 }
  0x26   :  { %59 = vsyncpa [#allocation4], 1 }

</bundles_post_ra>
